<compile_context>
chip_gen: v6e
topology: v6e:2x2x1
jax: 0.10.0
libtpu: 0.0.40
codegen_flags: <defaults>
</compile_context>

<pallas_src>
import functools

import jax
import jax.numpy as jnp
from jax import lax
from jax.experimental import pallas as pl
from jax.experimental.pallas import tpu as pltpu

_LANES = 128
# Per-input VMEM block byte budget (dtype-aware tiling).  ~2 MiB already sits
# near the HBM roofline on v5e/v6e; bump to 4 MiB when a 2-TC chip (v7x) is
# detected so the ~600-cycle per-step overhead stays amortized at 3.2 TB/s.
_BLOCK_BYTES_1TC = 2 * 1024 * 1024
_BLOCK_BYTES_2TC = 4 * 1024 * 1024


def _round_up(x, m):
    return ((x + m - 1) // m) * m


def _tensorcores_per_device():
    """Best-effort count of TensorCores per device (v7x = 2); conservative."""
    try:
        info = pltpu.get_tpu_info()
    except Exception:
        return 1
    for name in ("num_tensorcores", "tensorcores_per_chip", "cores_per_chip",
                 "num_cores_per_chip"):
        val = getattr(info, name, None)
        if isinstance(val, int) and val >= 1:
            return val
    return 1


_NUM_TCS = _tensorcores_per_device()
_CORE_PARALLEL = getattr(pltpu, "CORE_PARALLEL", getattr(pltpu, "PARALLEL", "parallel"))
_ARBITRARY = getattr(pltpu, "ARBITRARY", "arbitrary")


def _mse_partial_kernel(f1_ref, f2_ref, out_ref, *, rows, tile_rows,
                        steps_per_chunk, needs_mask):
    """Accumulates a per-chunk (8, 128) partial sum of (f1 - f2)^2."""
    c = pl.program_id(0)      # chunk (core) axis
    i = pl.program_id(1)      # sequential reduction axis

    @pl.when(i == 0)
    def _():
        out_ref[...] = jnp.zeros_like(out_ref)

    d = f1_ref[...].astype(jnp.float32) - f2_ref[...].astype(jnp.float32)
    sq = d * d

    def _accumulate(vals):
        # Vector-shaped accumulation: fold the tile to one vreg-shaped (8, 128)
        # partial with cheap leading-axis VPU adds; no per-step XLU collapse.
        partial = jnp.sum(vals.reshape(tile_rows // 8, 8, _LANES), axis=0)
        out_ref[...] += partial[None, :, :]

    if needs_mask:
        base = (c * steps_per_chunk + i) * tile_rows
        hangs = base + tile_rows > rows

        # Only tiles hanging past `rows` pay the iota/compare/select; interior
        # steps take the unmasked path so the kernel stays cleanly DMA-bound.
        @pl.when(hangs)
        def _():
            row_ids = lax.broadcasted_iota(jnp.int32, (tile_rows, 1), 0)
            _accumulate(jnp.where(row_ids < (rows - base), sq, 0.0))

        @pl.when(jnp.logical_not(hangs))
        def _():
            _accumulate(sq)
    else:
        _accumulate(sq)


def _slab(x):
    """Lane-dense (rows, 128) view of x (free reshape in the aligned case)."""
    flat = x.reshape(-1)
    if flat.size % _LANES != 0:
        # TODO(synk): the rare ragged (<128-element) tail still pays a one-off
        # pad copy; a copy-free path would need 1-D blocks / manual DMA and is
        # not worth the lowering risk here (padded zeros contribute nothing).
        flat = jnp.pad(flat, (0, _round_up(flat.size, _LANES) - flat.size))
    return flat.reshape(-1, _LANES)


@jax.jit
def feature_mse(f1, f2):
    """Pallas TPU implementation of F.mse_loss(f1, f2, reduction='mean')."""
    assert f1.shape == f2.shape, "FeatureMSE expects matching shapes"
    n_elems = f1.size

    slab1 = _slab(f1)
    slab2 = _slab(f2)
    rows = slab1.shape[0]

    # Dtype-aware block sizing: fixed byte budget per input buffer so bf16/int8
    # streams get equally large DMAs as f32 (fewer per-step overheads per byte).
    itemsize = jnp.dtype(slab1.dtype).itemsize
    pack = {4: 8, 2: 16, 1: 32}.get(itemsize, 8)      # sublane packing of block dim
    block_bytes = _BLOCK_BYTES_2TC if _NUM_TCS >= 2 else _BLOCK_BYTES_1TC
    budget_rows = max(pack, (block_bytes // (_LANES * itemsize)) // pack * pack)

    if rows % pack != 0 and rows < budget_rows:
        # Tiny, oddly-shaped slab: cheap row pad keeps the block sublane-aligned
        # and no larger than the slab (zero rows contribute nothing to the sum).
        pad_rows = _round_up(rows, pack) - rows
        slab1 = jnp.pad(slab1, ((0, pad_rows), (0, 0)))
        slab2 = jnp.pad(slab2, ((0, pad_rows), (0, 0)))
        rows += pad_rows

    tile_rows = min(budget_rows, rows) if rows % pack == 0 else budget_rows

    steps_total = -(-rows // tile_rows)
    # Only split the stream into chunks when there really are 2 TensorCores
    # (v7x); on single-TC v5e/v6e the extra chunk is just a sequential loop
    # with a duplicate-tile refetch and a forced mask.
    n_chunks = 2 if (_NUM_TCS >= 2 and steps_total >= 2) else 1
    steps_per_chunk = -(-steps_total // n_chunks)
    needs_mask = (n_chunks * steps_per_chunk * tile_rows) != rows
    last_block = steps_total - 1

    def in_index_map(c, i):
        # Clamp so every DMA stays in bounds; fully out-of-range (replicated)
        # tiles are zeroed by the in-kernel mask (which uses the UNclamped idx).
        return (jnp.minimum(c * steps_per_chunk + i, last_block), 0)

    def make_in_spec():
        if n_chunks >= 2 and hasattr(pl, "Buffered"):
            # Deeper input buffering where per-tile time is shortest (v7x).
            try:
                return pl.BlockSpec((tile_rows, _LANES), in_index_map,
                                    pipeline_mode=pl.Buffered(3))
            except TypeError:
                pass
        return pl.BlockSpec((tile_rows, _LANES), in_index_map)

    kernel = functools.partial(
        _mse_partial_kernel,
        rows=rows,
        tile_rows=tile_rows,
        steps_per_chunk=steps_per_chunk,
        needs_mask=needs_mask,
    )

    if n_chunks >= 2:
        dim_sem = (_CORE_PARALLEL, _ARBITRARY)     # true 2-TensorCore split
    else:
        dim_sem = ("arbitrary", "arbitrary")

    partials = pl.pallas_call(
        kernel,
        out_shape=jax.ShapeDtypeStruct((n_chunks, 8, _LANES), jnp.float32),
        grid_spec=pltpu.PrefetchScalarGridSpec(
            num_scalar_prefetch=0,
            grid=(n_chunks, steps_per_chunk),
            in_specs=[make_in_spec(), make_in_spec()],
            out_specs=pl.BlockSpec((1, 8, _LANES), lambda c, i: (c, 0, 0)),
        ),
        compiler_params=pltpu.CompilerParams(
            dimension_semantics=dim_sem,
            vmem_limit_bytes=32 * 1024 * 1024,
        ),
    )(slab1, slab2)

    # Tiny final collapse + mean (divide by the true, un-padded element count).
    return (jnp.sum(partials) / jnp.float32(n_elems)).astype(jnp.float32)


if __name__ == "__main__":
    key = jax.random.PRNGKey(0)
    k1, k2 = jax.random.split(key)

    # Primary test: small NCHW feature maps (conv-feature convention).
    B, C, H, W = 2, 4, 16, 16
    f1 = jax.random.normal(k1, (B, C, H, W), dtype=jnp.float32)
    f2 = jax.random.normal(k2, (B, C, H, W), dtype=jnp.float32)
    loss = feature_mse(f1, f2)
    jax.block_until_ready(loss)
    ref = jnp.mean((f1 - f2) ** 2)
    assert jnp.allclose(loss, ref, rtol=1e-5, atol=1e-6), (loss, ref)

    # Multi-tile stream with a masked (partial) last tile → gated-mask path.
    g1 = jax.random.normal(k1, (2, 16, 160, 128), dtype=jnp.float32)
    g2 = jax.random.normal(k2, (2, 16, 160, 128), dtype=jnp.float32)
    loss2 = feature_mse(g1, g2)
    jax.block_until_ready(loss2)
    ref2 = jnp.mean((g1 - g2) ** 2)
    assert jnp.allclose(loss2, ref2, rtol=1e-4, atol=1e-5), (loss2, ref2)

    # bf16 streaming (kept bf16 through the DMA, upcast in-kernel; byte-budget
    # tiling gives it the same-sized DMA blocks as f32).
    h1 = jax.random.normal(k1, (2, 8, 32, 32), dtype=jnp.bfloat16)
    h2 = jax.random.normal(k2, (2, 8, 32, 32), dtype=jnp.bfloat16)
    loss3 = feature_mse(h1, h2)
    jax.block_until_ready(loss3)
    ref3 = jnp.mean((h1.astype(jnp.float32) - h2.astype(jnp.float32)) ** 2)
    assert jnp.allclose(loss3, ref3, rtol=1e-3, atol=1e-3), (loss3, ref3)

    # Ragged element count (not a multiple of 128) and odd row count.
    r1 = jax.random.normal(k1, (2, 4, 10, 13), dtype=jnp.float32)
    r2 = jax.random.normal(k2, (2, 4, 10, 13), dtype=jnp.float32)
    loss4 = feature_mse(r1, r2)
    jax.block_until_ready(loss4)
    ref4 = jnp.mean((r1 - r2) ** 2)
    assert jnp.allclose(loss4, ref4, rtol=1e-5, atol=1e-6), (loss4, ref4)

    print("KERNEL_OK")
</pallas_src>

<mosaic_0001>
module attributes {stable_mosaic.version = 11 : i64} {
  func.func @_mse_partial_kernel(%arg0: i32, %arg1: i32, %arg2: memref<16x128xf32, #tpu.memory_space<vmem>>, %arg3: memref<16x128xf32, #tpu.memory_space<vmem>>, %arg4: memref<1x8x128xf32, #tpu.memory_space<vmem>>) attributes {dimension_semantics = [#tpu.dimension_semantics<arbitrary>, #tpu.dimension_semantics<arbitrary>], iteration_bounds = array<i64: 1, 1>, scalar_prefetch = 0 : i64, scratch_operands = 0 : i64, tpu.core_type = #tpu.core_type<tc>, window_params = [{transform_indices = @transform_0, window_bounds = array<i64: 16, 128>}, {transform_indices = @transform_1, window_bounds = array<i64: 16, 128>}, {transform_indices = @transform_2, window_bounds = array<i64: 1, 8, 128>}]} {
    %c0_i32 = arith.constant 0 : i32
    %0 = arith.cmpi eq, %arg1, %c0_i32 : i32
    %1 = arith.extui %0 : i1 to i32
    %c0_i32_0 = arith.constant 0 : i32
    %2 = arith.cmpi ne, %1, %c0_i32_0 : i32
    scf.if %2 {
      %cst_10 = arith.constant 0.000000e+00 : f32
      %13 = vector.broadcast %cst_10 : f32 to vector<1x8x128xf32>
      %c0_11 = arith.constant 0 : index
      %c0_12 = arith.constant 0 : index
      %c0_13 = arith.constant 0 : index
      %14 = vector.load %arg4[%c0_11, %c0_12, %c0_13] : memref<1x8x128xf32, #tpu.memory_space<vmem>>, vector<1x8x128xf32>
      tpu.vector_store %arg4[%c0_11, %c0_12, %c0_13], %13 {strides = array<i32>} : memref<1x8x128xf32, #tpu.memory_space<vmem>>, vector<1x8x128xf32>,
    } else {
    }
    %c0 = arith.constant 0 : index
    %c0_1 = arith.constant 0 : index
    %3 = vector.load %arg2[%c0, %c0_1] : memref<16x128xf32, #tpu.memory_space<vmem>>, vector<16x128xf32>
    %c0_2 = arith.constant 0 : index
    %c0_3 = arith.constant 0 : index
    %4 = vector.load %arg3[%c0_2, %c0_3] : memref<16x128xf32, #tpu.memory_space<vmem>>, vector<16x128xf32>
    %5 = arith.subf %3, %4 : vector<16x128xf32>
    %6 = arith.mulf %5, %5 : vector<16x128xf32>
    %7 = vector.shape_cast %6 : vector<16x128xf32> to vector<2x8x128xf32>
    %cst = arith.constant dense<0.000000e+00> : vector<8x128xf32>
    %8 = vector.multi_reduction <add>, %7, %cst [0] : vector<2x8x128xf32> to vector<8x128xf32>
    %c0_4 = arith.constant 0 : index
    %c0_5 = arith.constant 0 : index
    %c0_6 = arith.constant 0 : index
    %9 = vector.load %arg4[%c0_4, %c0_5, %c0_6] : memref<1x8x128xf32, #tpu.memory_space<vmem>>, vector<1x8x128xf32>
    %10 = vector.shape_cast %8 : vector<8x128xf32> to vector<1x8x128xf32>
    %11 = arith.addf %9, %10 : vector<1x8x128xf32>
    %c0_7 = arith.constant 0 : index
    %c0_8 = arith.constant 0 : index
    %c0_9 = arith.constant 0 : index
    %12 = vector.load %arg4[%c0_7, %c0_8, %c0_9] : memref<1x8x128xf32, #tpu.memory_space<vmem>>, vector<1x8x128xf32>
    tpu.vector_store %arg4[%c0_7, %c0_8, %c0_9], %11 {strides = array<i32>} : memref<1x8x128xf32, #tpu.memory_space<vmem>>, vector<1x8x128xf32>,
    return
  }
  func.func @transform_0(%arg0: i32, %arg1: i32) -> (i32, i32) {
    %c1_i32 = arith.constant 1 : i32
    %0 = arith.muli %arg0, %c1_i32 : i32
    %1 = arith.addi %0, %arg1 : i32
    %c0_i32 = arith.constant 0 : i32
    %2 = arith.minsi %1, %c0_i32 : i32
    %c0_i32_0 = arith.constant 0 : i32
    %c0_i32_1 = arith.constant 0 : i32
    return %2, %c0_i32_0 : i32, i32
  }
  func.func @transform_1(%arg0: i32, %arg1: i32) -> (i32, i32) {
    %c1_i32 = arith.constant 1 : i32
    %0 = arith.muli %arg0, %c1_i32 : i32
    %1 = arith.addi %0, %arg1 : i32
    %c0_i32 = arith.constant 0 : i32
    %2 = arith.minsi %1, %c0_i32 : i32
    %c0_i32_0 = arith.constant 0 : i32
    %c0_i32_1 = arith.constant 0 : i32
    return %2, %c0_i32_0 : i32, i32
  }
  func.func @transform_2(%arg0: i32, %arg1: i32) -> (i32, i32, i32) {
    %c0_i32 = arith.constant 0 : i32
    %c0_i32_0 = arith.constant 0 : i32
    %c0_i32_1 = arith.constant 0 : i32
    return %arg0, %c0_i32, %c0_i32_0 : i32, i32, i32
  }
}

</mosaic_0001>

<bundles_post_ra>
// kernel: feature_mse.1
= control target key start
LH: loop header
LB: loop body
LE: loop exit
PB: predicated region body
PF: predicated region fallthrough
CT: control target
= control target key end

     0   :  { %s139_s0 = inlined_call_operand.vmem [shape: f32[16,128], index: 0, kind: input, shape index: {}]   ;;  %s140_s1 = inlined_call_operand.vmem [shape: f32[16,128], index: 1, kind: input, shape index: {}]   ;;  %s141_s2 = inlined_call_operand.vmem [shape: f32[1,8,128], index: 2, kind: output, shape index: {}]  }
   0x1   :  { %v80_v0 = vld [vmem:[%s139_s0] sm:$0xff]  ;;  %v81_v1 = vld [vmem:[%s139_s0 + $0x8] sm:$0xff] }
   0x2   :  { %v82_v2 = vld [vmem:[%s140_s1] sm:$0xff]  ;;  %v83_v3 = vld [vmem:[%s140_s1 + $0x8] sm:$0xff] }
   0x3   :  { %v84_v4 = vsub.f32 %v80_v0, %v82_v2  ;;  %v85_v5 = vsub.f32 %v81_v1, %v83_v3 }
   0x5   :  { %v86_v6 = vmul.f32 %v84_v4, %v84_v4  ;;  %v87_v7 = vmul.f32 %v85_v5, %v85_v5 }
   0x7   :  { %v88_v8 = vadd.f32 %v87_v7, %v86_v6 }
   0x9   :  { %91 = vst [vmem:[%s141_s2] sm:$0xff] %v88_v8 }

</bundles_post_ra>
